<compile_context>
chip_gen: v7x
topology: tpu7x:2x2x1
jax: 0.10.0
libtpu: 0.0.40
codegen_flags: <defaults>
</compile_context>

<pallas_src>
import jax
import jax.numpy as jnp
from jax.experimental import pallas as pl
from jax.experimental.pallas import tpu as pltpu


LANES = 512            # multiple of 128 -> unmasked, lane-dense loads/stores
MAX_TILE_ROWS = 2048   # 2048 x 512 f32 = 4 MiB per block (multiple of 32)
SMALL_INPUT_BYTES = 1 << 20  # below this, plain XLA beats a pallas_call launch


def _round_up(a, b):
    return ((a + b - 1) // b) * b


def scale_kernel(mat_ref, x_ref, o_ref):
    # mat_ref: (1, 1) scalar in SMEM; x_ref/o_ref: (tile_rows, LANES) in VMEM.
    # Pure VPU scalar-broadcast multiply (f32 compute), HBM-bound.
    scale = mat_ref[0, 0].astype(jnp.float32)
    o_ref[...] = (scale * x_ref[...].astype(jnp.float32)).astype(o_ref.dtype)


def custom_param_forward(mat, x, *, force_pallas=False):
    """mat: (1, 1) parameter, x: (1, N) input  ->  (1, N) output (= mat @ x)."""
    M, K = mat.shape
    K2, N = x.shape
    assert M == 1 and K == 1 and K2 == 1, "CustomParam expects (1,1) @ (1,N)"
    out_dtype = jnp.result_type(mat.dtype, x.dtype)

    flat = x.reshape(-1)
    n = flat.shape[0]
    itemsize = jnp.dtype(x.dtype).itemsize

    # --- Small-N (or empty) bypass: plain XLA scalar multiply, no pallas_call.
    if n == 0 or (not force_pallas and n * itemsize < SMALL_INPUT_BYTES):
        return (mat[0, 0].astype(out_dtype) * x.astype(out_dtype)).astype(out_dtype)

    # --- Wrapper-side layout plumbing: lane-dense (rows, LANES) slab. ---
    sublane = max(8, 32 // itemsize)            # 8 (f32) / 16 (bf16) / 32 (int8)
    rows = pl.cdiv(n, LANES)
    padded_n = rows * LANES
    if padded_n != n:
        # Minimal pad (< LANES elements) just to make the reshape legal; the
        # ragged tail rows of the final block are masked by Pallas.
        flat = jnp.pad(flat, (0, padded_n - n))
    x2d = flat.reshape(rows, LANES)

    tile_rows = min(MAX_TILE_ROWS, _round_up(rows, sublane))
    grid = (pl.cdiv(rows, tile_rows),)

    # VMEM budget: (in + out) double-buffered blocks plus headroom.
    block_bytes = tile_rows * LANES * (itemsize + jnp.dtype(out_dtype).itemsize)
    vmem_limit = min(2 * block_bytes + (8 << 20), 48 << 20)

    out2d = pl.pallas_call(
        scale_kernel,
        out_shape=jax.ShapeDtypeStruct((rows, LANES), out_dtype),
        grid=grid,
        in_specs=[
            # Scalar parameter: whole (1,1) array in SMEM, read as mat_ref[0,0].
            pl.BlockSpec(memory_space=pltpu.MemorySpace.SMEM),
            # Lane-dense data tile, streamed with double-buffered DMA.
            pl.BlockSpec((tile_rows, LANES), lambda i: (i, 0)),
        ],
        out_specs=pl.BlockSpec((tile_rows, LANES), lambda i: (i, 0)),
        compiler_params=pltpu.CompilerParams(
            dimension_semantics=("parallel",),
            vmem_limit_bytes=vmem_limit,
        ),
    )(mat, x2d)

    if padded_n != n:
        return out2d.reshape(-1)[:n].reshape(1, N)
    return out2d.reshape(1, N)


if __name__ == "__main__":
    # Parameter init exactly as in the module's __init__: zeros(1, 1).
    mat_zero = jnp.zeros((1, 1), dtype=jnp.float32)

    key = jax.random.PRNGKey(0)
    k_x1, k_x2, k_x3, k_m = jax.random.split(key, 4)
    mat_nz = jax.random.normal(k_m, (1, 1), dtype=jnp.float32)

    # 1) Module-scale tiny input: exercises the small-N XLA bypass path.
    x_small = jax.random.normal(k_x1, (1, 32), dtype=jnp.float32)
    out = jax.block_until_ready(custom_param_forward(mat_zero, x_small))
    ref = mat_zero @ x_small
    assert out.shape == ref.shape == (1, 32)
    assert jnp.allclose(out, ref, atol=1e-6), "mismatch (zero mat, small N)"
    out = jax.block_until_ready(custom_param_forward(mat_nz, x_small))
    assert jnp.allclose(out, mat_nz @ x_small, atol=1e-6), "mismatch (small N)"

    # 2) Lane-aligned input forced through the Pallas kernel (zero-copy path).
    x_aligned = jax.random.normal(k_x2, (1, 512 * 64), dtype=jnp.float32)
    out = jax.block_until_ready(
        custom_param_forward(mat_nz, x_aligned, force_pallas=True))
    assert jnp.allclose(out, mat_nz @ x_aligned, atol=1e-6), "mismatch (aligned)"

    # 3) Non-aligned input above the dispatch threshold: default dispatch uses
    #    the Pallas path with a multi-step grid and a ragged, masked last block.
    n_big = 512 * 2048 + 100
    x_big = jax.random.normal(k_x3, (1, n_big), dtype=jnp.float32)
    out = jax.block_until_ready(custom_param_forward(mat_nz, x_big))
    assert out.shape == (1, n_big)
    assert jnp.allclose(out, mat_nz @ x_big, atol=1e-6), "mismatch (ragged big)"

    print("KERNEL_OK")
</pallas_src>

<mosaic_0001>
module attributes {stable_mosaic.version = 11 : i64} {
  func.func @scale_kernel(%arg0: i32, %arg1: memref<1x1xf32, #tpu.memory_space<smem>>, %arg2: memref<64x512xf32, #tpu.memory_space<vmem>>, %arg3: memref<64x512xf32, #tpu.memory_space<vmem>>) attributes {dimension_semantics = [#tpu.dimension_semantics<parallel>], iteration_bounds = array<i64: 1>, scalar_prefetch = 0 : i64, scratch_operands = 0 : i64, tpu.core_type = #tpu.core_type<tc>, window_params = [{transform_indices = @transform_0, window_bounds = array<i64: 1, 1>}, {transform_indices = @transform_1, window_bounds = array<i64: 64, 512>}, {transform_indices = @transform_2, window_bounds = array<i64: 64, 512>}]} {
    %c0 = arith.constant 0 : index
    %c0_0 = arith.constant 0 : index
    %0 = memref.load %arg1[%c0, %c0_0] : memref<1x1xf32, #tpu.memory_space<smem>>
    %c0_1 = arith.constant 0 : index
    %c0_2 = arith.constant 0 : index
    %1 = vector.load %arg2[%c0_1, %c0_2] : memref<64x512xf32, #tpu.memory_space<vmem>>, vector<64x512xf32>
    %2 = vector.broadcast %0 : f32 to vector<64x512xf32>
    %3 = arith.mulf %2, %1 : vector<64x512xf32>
    %c0_3 = arith.constant 0 : index
    %c0_4 = arith.constant 0 : index
    %4 = vector.load %arg3[%c0_3, %c0_4] : memref<64x512xf32, #tpu.memory_space<vmem>>, vector<64x512xf32>
    tpu.vector_store %arg3[%c0_3, %c0_4], %3 {strides = array<i32>} : memref<64x512xf32, #tpu.memory_space<vmem>>, vector<64x512xf32>,
    return
  }
  func.func @transform_0(%arg0: i32) -> (i32, i32) {
    %c0_i32 = arith.constant 0 : i32
    %c0_i32_0 = arith.constant 0 : i32
    %c0_i32_1 = arith.constant 0 : i32
    return %c0_i32, %c0_i32_0 : i32, i32
  }
  func.func @transform_1(%arg0: i32) -> (i32, i32) {
    %c0_i32 = arith.constant 0 : i32
    %c0_i32_0 = arith.constant 0 : i32
    return %arg0, %c0_i32 : i32, i32
  }
  func.func @transform_2(%arg0: i32) -> (i32, i32) {
    %c0_i32 = arith.constant 0 : i32
    %c0_i32_0 = arith.constant 0 : i32
    return %arg0, %c0_i32 : i32, i32
  }
}

</mosaic_0001>

<bundles_post_ra>
// kernel: tpu_custom_call.1
= control target key start
LH: loop header
LB: loop body
LE: loop exit
PB: predicated region body
PF: predicated region fallthrough
CT: control target
= control target key end

     0   :  { %8 = vsyncpa [#allocation4], 0  ;;  %s280_s0 = inlined_call_operand.<no memory space> [shape: f32[1,1], index: 0, kind: input, shape index: {}]   ;;  %s281_s1 = inlined_call_operand.hbm [shape: f32[64,512], index: 1, kind: input, shape index: {}]   ;;  %s282_s2 = inlined_call_operand.hbm [shape: f32[64,512], index: 2, kind: output, shape index: {}]  }
   0x1   :  { %9 = vsyncpa [#allocation5], 0  ;;  %s194_s9 = smov [#allocation3]   ;;  %s146_s13 = scalar_lea.hbm %s281_s1, 4096 }
   0x2   :  { %s17_s10 = sshll.u32 %s194_s9, 4  ;;  %p147_p0 = scmp.ne.s32.totalorder %s281_s1, %s146_s13  ;;  %s18_s10 = int_to_ptr.vmem [resolvable:$true] %s17_s10 }
   0x3   :  { %p150_p1 = scmp.lt.u32.totalorder %s146_s13, %s281_s1 }
   0x5   :  { %p152_p2 = pnand %p150_p1, %p147_p0 }
   0x7   :  { %155 = shalt.err (!%p152_p2)
}
   0x8   :  { %s156_s18 = scalar_lea.vmem %s18_s10, 4096  ;;  %p161_p4 = scmp.lt.s32.totalorder %s18_s10, %s18_s10 }
   0x9   :  { %p157_p3 = scmp.ne.s32.totalorder %s18_s10, %s156_s18  ;;  %p162_p5 = scmp.lt.s32.totalorder %s156_s18, %s156_s18 }
   0xb   :  { %p163_p6 = por %p162_p5, %p161_p4 }
   0xd   :  { %p164_p7 = pnand %p163_p6, %p157_p3 }
   0xf   :  { %167 = shalt.err (!%p164_p7)
}
  0x10   :  { %s195_s19 = smov 512   ;;  %s196_s20 = smov 32  }
  0x11   :  { %23 = dma.hbm_to_vmem [thread:$0]  %s281_s1, 4096, %s18_s10, [#allocation4], %s195_s19, %s195_s19, %s196_s20  }
  0x12   :  { %190 = dma.done.wait [#allocation4], 4096  }
  0x13   :  { %191 = vsyncadd [#allocation4], 4294963200  ;;  %v231_v0 = vstv %s280_s0  ;;  %v28_v1 = vld [vmem:[#allocation3] sm:$0xff]  ;;  %v29_v2 = vld [vmem:[#allocation3 + $0x8] sm:$0xff]  ;;  %s197_s0 = smov [#allocation6]  }
  0x14   :  { %v30_v3 = vld [vmem:[#allocation3 + $0x10] sm:$0xff]  ;;  %v61_v4 = vmul.f32 %v231_v0, %v28_v1  ;;  %v62_v5 = vmul.f32 %v231_v0, %v29_v2  ;;  %v31_v7 = vld [vmem:[#allocation3 + $0x18] sm:$0xff]  ;;  %v32_v8 = vld [vmem:[#allocation3 + $0x20] sm:$0xff]  ;;  %s130_s1 = sshll.u32 %s197_s0, 4  ;;  %s131_s1 = int_to_ptr.vmem [resolvable:$true] %s130_s1 }
  0x15   :  { %v63_v6 = vmul.f32 %v231_v0, %v30_v3  ;;  %v33_v9 = vld [vmem:[#allocation3 + $0x28] sm:$0xff]  ;;  %v64_v10 = vmul.f32 %v231_v0, %v31_v7  ;;  %v65_v11 = vmul.f32 %v231_v0, %v32_v8  ;;  %v34_v13 = vld [vmem:[#allocation3 + $0x30] sm:$0xff]  ;;  %v35_v14 = vld [vmem:[#allocation3 + $0x38] sm:$0xff]  ;;  %s168_s25 = scalar_lea.vmem %s131_s1, 4096  ;;  %p173_p9 = scmp.lt.s32.totalorder %s131_s1, %s131_s1 }
  0x16   :  { %v66_v12 = vmul.f32 %v231_v0, %v33_v9  ;;  %v36_v15 = vld [vmem:[#allocation3 + $0x40] sm:$0xff]  ;;  %93 = vst [vmem:[#allocation6] sm:$0xff] %v61_v4  ;;  %94 = vst [vmem:[#allocation6 + $0x8] sm:$0xff] %v62_v5  ;;  %v67_v16 = vmul.f32 %v231_v0, %v34_v13  ;;  %v68_v17 = vmul.f32 %v231_v0, %v35_v14  ;;  %v37_v19 = vld [vmem:[#allocation3 + $0x48] sm:$0xff]  ;;  %p169_p8 = scmp.ne.s32.totalorder %s131_s1, %s168_s25  ;;  %p174_p10 = scmp.lt.s32.totalorder %s168_s25, %s168_s25 }
  0x17   :  { %95 = vst [vmem:[#allocation6 + $0x10] sm:$0xff] %v63_v6  ;;  %v69_v18 = vmul.f32 %v231_v0, %v36_v15  ;;  %v38_v20 = vld [vmem:[#allocation3 + $0x50] sm:$0xff]  ;;  %v39_v21 = vld [vmem:[#allocation3 + $0x58] sm:$0xff]  ;;  %96 = vst [vmem:[#allocation6 + $0x18] sm:$0xff] %v64_v10  ;;  %v70_v22 = vmul.f32 %v231_v0, %v37_v19 }
  0x18   :  { %97 = vst [vmem:[#allocation6 + $0x20] sm:$0xff] %v65_v11  ;;  %98 = vst [vmem:[#allocation6 + $0x28] sm:$0xff] %v66_v12  ;;  %v71_v23 = vmul.f32 %v231_v0, %v38_v20  ;;  %v72_v24 = vmul.f32 %v231_v0, %v39_v21  ;;  %v40_v25 = vld [vmem:[#allocation3 + $0x60] sm:$0xff]  ;;  %v41_v26 = vld [vmem:[#allocation3 + $0x68] sm:$0xff]  ;;  %p175_p11 = por %p174_p10, %p173_p9 }
  0x19   :  { %v42_v27 = vld [vmem:[#allocation3 + $0x70] sm:$0xff]  ;;  %99 = vst [vmem:[#allocation6 + $0x30] sm:$0xff] %v67_v16  ;;  %100 = vst [vmem:[#allocation6 + $0x38] sm:$0xff] %v68_v17  ;;  %v73_v28 = vmul.f32 %v231_v0, %v40_v25  ;;  %v74_v29 = vmul.f32 %v231_v0, %v41_v26  ;;  %v43_v31 = vld [vmem:[#allocation3 + $0x78] sm:$0xff] }
  0x1a   :  { %101 = vst [vmem:[#allocation6 + $0x40] sm:$0xff] %v69_v18  ;;  %v75_v30 = vmul.f32 %v231_v0, %v42_v27  ;;  %v44_v32 = vld [vmem:[#allocation3 + $0x80] sm:$0xff]  ;;  %v45_v33 = vld [vmem:[#allocation3 + $0x88] sm:$0xff]  ;;  %102 = vst [vmem:[#allocation6 + $0x48] sm:$0xff] %v70_v22  ;;  %v76_v34 = vmul.f32 %v231_v0, %v43_v31  ;;  %p176_p12 = pnand %p175_p11, %p169_p8 }
  0x1b   :  { %103 = vst [vmem:[#allocation6 + $0x50] sm:$0xff] %v71_v23  ;;  %104 = vst [vmem:[#allocation6 + $0x58] sm:$0xff] %v72_v24  ;;  %v77_v35 = vmul.f32 %v231_v0, %v44_v32  ;;  %v78_v36 = vmul.f32 %v231_v0, %v45_v33  ;;  %v46_v37 = vld [vmem:[#allocation3 + $0x90] sm:$0xff]  ;;  %v47_v38 = vld [vmem:[#allocation3 + $0x98] sm:$0xff] }
  0x1c   :  { %v48_v39 = vld [vmem:[#allocation3 + $0xa0] sm:$0xff]  ;;  %105 = vst [vmem:[#allocation6 + $0x60] sm:$0xff] %v73_v28  ;;  %106 = vst [vmem:[#allocation6 + $0x68] sm:$0xff] %v74_v29  ;;  %v79_v40 = vmul.f32 %v231_v0, %v46_v37  ;;  %v80_v41 = vmul.f32 %v231_v0, %v47_v38  ;;  %v49_v43 = vld [vmem:[#allocation3 + $0xa8] sm:$0xff] }
  0x1d   :  { %107 = vst [vmem:[#allocation6 + $0x70] sm:$0xff] %v75_v30  ;;  %v81_v42 = vmul.f32 %v231_v0, %v48_v39  ;;  %v50_v44 = vld [vmem:[#allocation3 + $0xb0] sm:$0xff]  ;;  %v51_v45 = vld [vmem:[#allocation3 + $0xb8] sm:$0xff]  ;;  %108 = vst [vmem:[#allocation6 + $0x78] sm:$0xff] %v76_v34  ;;  %v82_v46 = vmul.f32 %v231_v0, %v49_v43 }
  0x1e   :  { %109 = vst [vmem:[#allocation6 + $0x80] sm:$0xff] %v77_v35  ;;  %110 = vst [vmem:[#allocation6 + $0x88] sm:$0xff] %v78_v36  ;;  %v83_v47 = vmul.f32 %v231_v0, %v50_v44  ;;  %v84_v48 = vmul.f32 %v231_v0, %v51_v45  ;;  %v52_v49 = vld [vmem:[#allocation3 + $0xc0] sm:$0xff]  ;;  %v53_v50 = vld [vmem:[#allocation3 + $0xc8] sm:$0xff] }
  0x1f   :  { %v54_v51 = vld [vmem:[#allocation3 + $0xd0] sm:$0xff]  ;;  %111 = vst [vmem:[#allocation6 + $0x90] sm:$0xff] %v79_v40  ;;  %112 = vst [vmem:[#allocation6 + $0x98] sm:$0xff] %v80_v41  ;;  %v85_v52 = vmul.f32 %v231_v0, %v52_v49  ;;  %v86_v53 = vmul.f32 %v231_v0, %v53_v50  ;;  %v55_v55 = vld [vmem:[#allocation3 + $0xd8] sm:$0xff] }
  0x20   :  { %113 = vst [vmem:[#allocation6 + $0xa0] sm:$0xff] %v81_v42  ;;  %v87_v54 = vmul.f32 %v231_v0, %v54_v51  ;;  %v56_v56 = vld [vmem:[#allocation3 + $0xe0] sm:$0xff]  ;;  %v57_v57 = vld [vmem:[#allocation3 + $0xe8] sm:$0xff]  ;;  %114 = vst [vmem:[#allocation6 + $0xa8] sm:$0xff] %v82_v46  ;;  %v88_v58 = vmul.f32 %v231_v0, %v55_v55 }
  0x21   :  { %115 = vst [vmem:[#allocation6 + $0xb0] sm:$0xff] %v83_v47  ;;  %116 = vst [vmem:[#allocation6 + $0xb8] sm:$0xff] %v84_v48  ;;  %v89_v59 = vmul.f32 %v231_v0, %v56_v56  ;;  %v90_v60 = vmul.f32 %v231_v0, %v57_v57  ;;  %v58_v61 = vld [vmem:[#allocation3 + $0xf0] sm:$0xff]  ;;  %v59_v62 = vld [vmem:[#allocation3 + $0xf8] sm:$0xff] }
  0x22   :  { %117 = vst [vmem:[#allocation6 + $0xc0] sm:$0xff] %v85_v52  ;;  %118 = vst [vmem:[#allocation6 + $0xc8] sm:$0xff] %v86_v53  ;;  %v91_v63 = vmul.f32 %v231_v0, %v58_v61  ;;  %v92_v1 = vmul.f32 %v231_v0, %v59_v62 }
  0x23   :  { %119 = vst [vmem:[#allocation6 + $0xd0] sm:$0xff] %v87_v54  ;;  %120 = vst [vmem:[#allocation6 + $0xd8] sm:$0xff] %v88_v58 }
  0x24   :  { %121 = vst [vmem:[#allocation6 + $0xe0] sm:$0xff] %v89_v59  ;;  %122 = vst [vmem:[#allocation6 + $0xe8] sm:$0xff] %v90_v60 }
  0x25   :  { %123 = vst [vmem:[#allocation6 + $0xf0] sm:$0xff] %v91_v63  ;;  %124 = vst [vmem:[#allocation6 + $0xf8] sm:$0xff] %v92_v1 }
  0x26   :  { %179 = shalt.err (!%p176_p12)
}
  0x27   :  { %s180_s28 = scalar_lea.hbm %s282_s2, 4096 }
  0x28   :  { %p181_p13 = scmp.ne.s32.totalorder %s282_s2, %s180_s28  ;;  %p184_p0 = scmp.lt.u32.totalorder %s180_s28, %s282_s2 }
  0x2a   :  { %p186_p1 = pnand %p184_p0, %p181_p13 }
  0x2c   :  { %189 = shalt.err (!%p186_p1)
}
  0x2d   :  { %136 = dma.vmem_to_hbm [thread:$0]  %s131_s1, 4096, %s282_s2, [#allocation5], %s195_s19, %s195_s19, %s196_s20  }
  0x2e   :  { %192 = dma.done.wait [#allocation5], 4096  }
  0x2f   :  { %193 = vsyncadd [#allocation5], 4294963200 }
  0x30   :  { %140 = vsyncpa [#allocation4], 1 }
  0x31   :  { %141 = vsyncpa [#allocation5], 1 }

</bundles_post_ra>
